<compile_context>
chip_gen: v5e
topology: v5e:2x2
jax: 0.10.0
libtpu: 0.0.40
codegen_flags: <defaults>
</compile_context>

<pallas_src>
import math

import jax
import jax.numpy as jnp
from jax.experimental import pallas as pl
from jax.experimental.pallas import tpu as pltpu


def _round_up(x, m):
    return ((x + m - 1) // m) * m


def _discriminator_kernel(x_ref, w1_ref, b1_ref, w2_ref, b2_ref, o_ref):
    # Layer 1 on the MXU. x is cast to bf16 here (VPU, hidden under the x DMA) rather
    # than in a separate wrapper pass over HBM.
    x_bf = x_ref[...].astype(jnp.bfloat16)
    h = jnp.dot(x_bf, w1_ref[...], preferred_element_type=jnp.float32)     # (TM, Hp) f32
    h = jnp.maximum(h + b1_ref[...], 0.0)                                  # bias + ReLU (VPU)
    # Layer 2: (TM, Hp) @ (Hp, 1) on the MXU -- natural layouts, no transpose of h.
    logit = jnp.dot(h, w2_ref[...], preferred_element_type=jnp.float32)    # (TM, 1)
    o_ref[...] = jax.nn.sigmoid(logit + b2_ref[0]).astype(o_ref.dtype)


def _vmem_capacity_bytes():
    """Best-effort per-core VMEM capacity (conservative default = 64 MiB, i.e. v7x)."""
    try:
        return int(pltpu.get_tpu_info().vmem_capacity_bytes)
    except Exception:
        pass
    try:
        kind = jax.devices()[0].device_kind.lower()
    except Exception:
        kind = ""
    if "v2" in kind or "v3" in kind:
        return 16 * 1024 * 1024
    if "v4" in kind or "v5" in kind or "v6" in kind:
        return 128 * 1024 * 1024
    return 64 * 1024 * 1024


def _per_row_vmem_bytes(D, Hp, x_itemsize):
    # Double-buffered x tile (lane-padded to 128), hidden activations (+ one elementwise
    # temp), and the double-buffered (lane-padded) output tile.
    lanes = max(128, _round_up(D, 128))
    return 2 * lanes * x_itemsize + 2 * Hp * 4 + 2 * 128 * 4


def _choose_tm(B, D, Hp, x_itemsize, tile_budget_bytes, target_tile_bytes):
    sub = 8 if x_itemsize >= 4 else 16                     # sublane granularity for x blocks
    b_cap = _round_up(B, sub)
    # Bytes-based tile: enough *real* x bytes per grid step to amortize step overhead.
    tm = _round_up(max(1, target_tile_bytes // max(1, D * x_itemsize)), 128)
    # VMEM cap from the per-row footprint model.
    per_row = _per_row_vmem_bytes(D, Hp, x_itemsize)
    tm_vmem = (tile_budget_bytes // per_row) // 128 * 128
    if tm_vmem >= 128:
        tm = min(tm, tm_vmem)
    tm = max(sub, min(tm, b_cap))
    # Keep >=2 grid steps when the batch is big enough (v7x: two TensorCores on the
    # "parallel" batch axis) and each half still moves >= ~1 MiB of real x.
    if tm >= b_cap and B * D * x_itemsize >= (2 << 20):
        tm = min(tm, _round_up(-(-b_cap // 2), 128))
    return tm


def discriminator_forward(x, w1, b1, w2, b2, *, target_tile_bytes=2 << 20):
    """Pallas forward of the Discriminator: sigmoid(relu(x @ W1 + b1) @ W2 + b2).

    x : [B, D]  float32 (or bfloat16) -- streamed to the kernel in batch tiles
    w1: [D, H], b1: [H] or [1, H], w2: [H, 1] or [H], b2: scalar / [1]
    returns: [B, 1] float32 in (0, 1)
    """
    B, D = x.shape
    H = w1.shape[1]
    Hp = _round_up(H, 128)                                  # lane-pad hidden dim (weights only)

    if x.dtype not in (jnp.float32, jnp.bfloat16):
        x = x.astype(jnp.float32)
    itemsize = jnp.dtype(x.dtype).itemsize

    cap = _vmem_capacity_bytes()
    tile_budget = max(4 << 20, cap - (20 << 20))            # headroom: Mosaic scratch + weights
    TM = _choose_tm(B, D, Hp, itemsize, tile_budget, target_tile_bytes)
    num_tiles = -(-B // TM)   # ceil; ragged final block is clamped by Pallas (no x pad copy)

    vmem_limit = int(min(cap - (2 << 20),
                         max(24 << 20,
                             _per_row_vmem_bytes(D, Hp, itemsize) * TM + (8 << 20))))

    # Weight-side layout plumbing only (tiny tensors; the dominant x stream is untouched).
    w1_p = jnp.asarray(w1, jnp.float32)
    b1_p = jnp.asarray(b1, jnp.float32).reshape(1, H)
    w2_p = jnp.asarray(w2, jnp.float32).reshape(H, 1)
    if Hp != H:
        # Zero padding: padded hidden units give relu(0 + 0) = 0 and have zero w2 rows,
        # so they contribute nothing.
        w1_p = jnp.pad(w1_p, ((0, 0), (0, Hp - H)))
        b1_p = jnp.pad(b1_p, ((0, 0), (0, Hp - H)))
        w2_p = jnp.pad(w2_p, ((0, Hp - H), (0, 0)))
    w1_bf = w1_p.astype(jnp.bfloat16)
    b2_s = jnp.asarray(b2, jnp.float32).reshape(1)

    def build(single_buffer_weights):
        res = {"pipeline_mode": pl.Buffered(1)} if single_buffer_weights else {}
        return pl.pallas_call(
            _discriminator_kernel,
            out_shape=jax.ShapeDtypeStruct((B, 1), jnp.float32),
            grid=(num_tiles,),
            in_specs=[
                pl.BlockSpec((TM, D), lambda i: (i, 0)),             # x: streamed batch tile
                pl.BlockSpec((D, Hp), lambda i: (0, 0), **res),      # w1: resident
                pl.BlockSpec((1, Hp), lambda i: (0, 0), **res),      # b1: resident
                pl.BlockSpec((Hp, 1), lambda i: (0, 0), **res),      # w2: resident
                pl.BlockSpec(memory_space=pltpu.MemorySpace.SMEM),   # b2: scalar in SMEM
            ],
            out_specs=pl.BlockSpec((TM, 1), lambda i: (i, 0)),
            compiler_params=pltpu.CompilerParams(
                dimension_semantics=("parallel",),
                vmem_limit_bytes=vmem_limit,
            ),
        )

    args = (x, w1_bf, b1_p, w2_p, b2_s)
    try:
        return build(True)(*args)
    except Exception:
        # TODO(synk): drop this fallback once pl.Buffered(1) on constant-index BlockSpecs
        # is guaranteed by the deployed JAX; double-buffering the small resident weights
        # is the safe (slightly more VMEM-hungry) default.
        return build(False)(*args)


def init_discriminator_params(key, input_dim, hidden_dim):
    """Deterministic init mirroring nn.Linear's default U(-1/sqrt(fan_in), 1/sqrt(fan_in))."""
    k1, k2, k3, k4 = jax.random.split(key, 4)
    bound1 = 1.0 / math.sqrt(input_dim)
    bound2 = 1.0 / math.sqrt(hidden_dim)
    w1 = jax.random.uniform(k1, (input_dim, hidden_dim), jnp.float32, -bound1, bound1)
    b1 = jax.random.uniform(k2, (1, hidden_dim), jnp.float32, -bound1, bound1)
    w2 = jax.random.uniform(k3, (hidden_dim, 1), jnp.float32, -bound2, bound2)
    b2 = jax.random.uniform(k4, (1,), jnp.float32, -bound2, bound2)
    return w1, b1, w2, b2


if __name__ == "__main__":
    # Small shapes consistent with the module: x is [batch, input_dim].
    batch = 8
    input_dim = 16         # one-hot-flattened DNA feature length (toy)
    hidden_dim_small = 32  # scaled-down stand-in for the module's hidden_dim=256

    key = jax.random.PRNGKey(0)
    kx, kp = jax.random.split(key)
    x = jax.random.uniform(kx, (batch, input_dim), jnp.float32)
    w1, b1, w2, b2 = init_discriminator_params(kp, input_dim, hidden_dim_small)

    out = discriminator_forward(x, w1, b1, w2, b2)
    out = jax.block_until_ready(out)

    # Reference mirroring the kernel's numerics (bf16 MXU feed for layer 1, f32 elsewhere).
    h_ref = jnp.maximum(
        jnp.dot(x.astype(jnp.bfloat16), w1.astype(jnp.bfloat16),
                preferred_element_type=jnp.float32) + b1, 0.0)
    ref = jax.nn.sigmoid(h_ref @ w2 + b2.reshape(1, 1))

    assert out.shape == (batch, 1)
    assert bool(jnp.all(jnp.isfinite(out)))
    assert jnp.allclose(out, ref, atol=1e-3, rtol=1e-3), (
        f"max abs diff = {float(jnp.max(jnp.abs(out - ref)))}")

    print("KERNEL_OK")
</pallas_src>

<mosaic_0001>
module attributes {stable_mosaic.version = 11 : i64} {
  func.func @_discriminator_kernel(%arg0: i32, %arg1: memref<8x16xf32, #tpu.memory_space<vmem>>, %arg2: memref<16x128xbf16, #tpu.memory_space<vmem>>, %arg3: memref<1x128xf32, #tpu.memory_space<vmem>>, %arg4: memref<128x1xf32, #tpu.memory_space<vmem>>, %arg5: memref<1xf32, #tpu.memory_space<smem>>, %arg6: memref<8x1xf32, #tpu.memory_space<vmem>>) attributes {dimension_semantics = [#tpu.dimension_semantics<parallel>], iteration_bounds = array<i64: 1>, scalar_prefetch = 0 : i64, scratch_operands = 0 : i64, tpu.core_type = #tpu.core_type<tc>, window_params = [{transform_indices = @transform_0, window_bounds = array<i64: 8, 16>}, {pipeline_mode = #tpu.pipeline_mode<synchronous>, transform_indices = @transform_1, window_bounds = array<i64: 16, 128>}, {pipeline_mode = #tpu.pipeline_mode<synchronous>, transform_indices = @transform_2, window_bounds = array<i64: 1, 128>}, {pipeline_mode = #tpu.pipeline_mode<synchronous>, transform_indices = @transform_3, window_bounds = array<i64: 128, 1>}, {transform_indices = @transform_4, window_bounds = array<i64: 1>}, {transform_indices = @transform_5, window_bounds = array<i64: 8, 1>}]} {
    %c0 = arith.constant 0 : index
    %c0_0 = arith.constant 0 : index
    %0 = vector.load %arg1[%c0, %c0_0] : memref<8x16xf32, #tpu.memory_space<vmem>>, vector<8x16xf32>
    %1 = arith.truncf %0 : vector<8x16xf32> to vector<8x16xbf16>
    %c0_1 = arith.constant 0 : index
    %c0_2 = arith.constant 0 : index
    %2 = vector.load %arg2[%c0_1, %c0_2] : memref<16x128xbf16, #tpu.memory_space<vmem>>, vector<16x128xbf16>
    %cst = arith.constant dense<0.000000e+00> : vector<8x128xf32>
    %3 = tpu.matmul %1, %2, %cst {dimension_numbers = #tpu.dot_dimension_numbers<[1], [0], [0], [1], [0, 0, 1, 1], [], []>} : vector<8x16xbf16>, vector<16x128xbf16>, vector<8x128xf32> -> vector<8x128xf32>
    %c0_3 = arith.constant 0 : index
    %c0_4 = arith.constant 0 : index
    %4 = vector.load %arg3[%c0_3, %c0_4] : memref<1x128xf32, #tpu.memory_space<vmem>>, vector<1x128xf32>
    %5 = vector.broadcast %4 : vector<1x128xf32> to vector<8x128xf32>
    %6 = arith.addf %3, %5 : vector<8x128xf32>
    %cst_5 = arith.constant 0.000000e+00 : f32
    %7 = vector.broadcast %cst_5 : f32 to vector<8x128xf32>
    %8 = arith.maximumf %6, %7 : vector<8x128xf32>
    %c0_6 = arith.constant 0 : index
    %c0_7 = arith.constant 0 : index
    %9 = vector.load %arg4[%c0_6, %c0_7] : memref<128x1xf32, #tpu.memory_space<vmem>>, vector<128x1xf32>
    %cst_8 = arith.constant dense<0.000000e+00> : vector<8x1xf32>
    %10 = tpu.matmul %8, %9, %cst_8 {dimension_numbers = #tpu.dot_dimension_numbers<[1], [0], [0], [1], [0, 0, 1, 1], [], []>} : vector<8x128xf32>, vector<128x1xf32>, vector<8x1xf32> -> vector<8x1xf32>
    %c0_9 = arith.constant 0 : index
    %11 = memref.load %arg5[%c0_9] : memref<1xf32, #tpu.memory_space<smem>>
    %12 = vector.broadcast %11 : f32 to vector<8x1xf32>
    %13 = arith.addf %10, %12 : vector<8x1xf32>
    %14 = arith.negf %13 : vector<8x1xf32>
    %15 = math.exp %14 : vector<8x1xf32>
    %cst_10 = arith.constant 1.000000e+00 : f32
    %16 = vector.broadcast %cst_10 : f32 to vector<8x1xf32>
    %17 = arith.addf %16, %15 : vector<8x1xf32>
    %18 = arith.divf %16, %17 : vector<8x1xf32>
    %c0_11 = arith.constant 0 : index
    %c0_12 = arith.constant 0 : index
    %19 = vector.load %arg6[%c0_11, %c0_12] : memref<8x1xf32, #tpu.memory_space<vmem>>, vector<8x1xf32>
    tpu.vector_store %arg6[%c0_11, %c0_12], %18 {strides = array<i32>} : memref<8x1xf32, #tpu.memory_space<vmem>>, vector<8x1xf32>,
    return
  }
  func.func @transform_0(%arg0: i32) -> (i32, i32) {
    %c0_i32 = arith.constant 0 : i32
    %c0_i32_0 = arith.constant 0 : i32
    return %arg0, %c0_i32 : i32, i32
  }
  func.func @transform_1(%arg0: i32) -> (i32, i32) {
    %c0_i32 = arith.constant 0 : i32
    %c0_i32_0 = arith.constant 0 : i32
    %c0_i32_1 = arith.constant 0 : i32
    return %c0_i32, %c0_i32_0 : i32, i32
  }
  func.func @transform_2(%arg0: i32) -> (i32, i32) {
    %c0_i32 = arith.constant 0 : i32
    %c0_i32_0 = arith.constant 0 : i32
    %c0_i32_1 = arith.constant 0 : i32
    return %c0_i32, %c0_i32_0 : i32, i32
  }
  func.func @transform_3(%arg0: i32) -> (i32, i32) {
    %c0_i32 = arith.constant 0 : i32
    %c0_i32_0 = arith.constant 0 : i32
    %c0_i32_1 = arith.constant 0 : i32
    return %c0_i32, %c0_i32_0 : i32, i32
  }
  func.func @transform_4(%arg0: i32) -> i32 {
    %c0_i32 = arith.constant 0 : i32
    %c0_i32_0 = arith.constant 0 : i32
    return %c0_i32 : i32
  }
  func.func @transform_5(%arg0: i32) -> (i32, i32) {
    %c0_i32 = arith.constant 0 : i32
    %c0_i32_0 = arith.constant 0 : i32
    return %arg0, %c0_i32 : i32, i32
  }
}

module attributes {stable_mosaic.version = 11 : i64} {
  func.func @_discriminator_kernel(%arg0: i32, %arg1: memref<8x16xf32, #tpu.memory_space<vmem>>, %arg2: memref<16x128xbf16, #tpu.memory_space<vmem>>, %arg3: memref<1x128xf32, #tpu.memory_space<vmem>>, %arg4: memref<128x1xf32, #tpu.memory_space<vmem>>, %arg5: memref<1xf32, #tpu.memory_space<smem>>, %arg6: memref<8x1xf32, #tpu.memory_space<vmem>>) attributes {dimension_semantics = [#tpu.dimension_semantics<parallel>], iteration_bounds = array<i64: 1>, scalar_prefetch = 0 : i64, scratch_operands = 0 : i64, tpu.core_type = #tpu.core_type<tc>, window_params = [{transform_indices = @transform_0, window_bounds = array<i64: 8, 16>}, {pipeline_mode = #tpu.pipeline_mode<synchronous>, transform_indices = @transform_1, window_bounds = array<i64: 16, 128>}, {pipeline_mode = #tpu.pipeline_mode<synchronous>, transform_indices = @transform_2, window_bounds = array<i64: 1, 128>}, {pipeline_mode = #tpu.pipeline_mode<synchronous>, transform_indices = @transform_3, window_bounds = array<i64: 128, 1>}, {transform_indices = @transform_4, window_bounds = array<i64: 1>}, {transform_indices = @transform_5, window_bounds = array<i64: 8, 1>}]} {
    %c0 = arith.constant 0 : index
    %c0_0 = arith.constant 0 : index
    %0 = vector.load %arg1[%c0, %c0_0] : memref<8x16xf32, #tpu.memory_space<vmem>>, vector<8x16xf32>
    %1 = arith.truncf %0 : vector<8x16xf32> to vector<8x16xbf16>
    %c0_1 = arith.constant 0 : index
    %c0_2 = arith.constant 0 : index
    %2 = vector.load %arg2[%c0_1, %c0_2] : memref<16x128xbf16, #tpu.memory_space<vmem>>, vector<16x128xbf16>
    %cst = arith.constant dense<0.000000e+00> : vector<8x128xf32>
    %3 = tpu.matmul %1, %2, %cst {dimension_numbers = #tpu.dot_dimension_numbers<[1], [0], [0], [1], [0, 0, 1, 1], [], []>} : vector<8x16xbf16>, vector<16x128xbf16>, vector<8x128xf32> -> vector<8x128xf32>
    %c0_3 = arith.constant 0 : index
    %c0_4 = arith.constant 0 : index
    %4 = vector.load %arg3[%c0_3, %c0_4] : memref<1x128xf32, #tpu.memory_space<vmem>>, vector<1x128xf32>
    %5 = vector.broadcast %4 : vector<1x128xf32> to vector<8x128xf32>
    %6 = arith.addf %3, %5 : vector<8x128xf32>
    %cst_5 = arith.constant 0.000000e+00 : f32
    %7 = vector.broadcast %cst_5 : f32 to vector<8x128xf32>
    %8 = arith.maximumf %6, %7 : vector<8x128xf32>
    %c0_6 = arith.constant 0 : index
    %c0_7 = arith.constant 0 : index
    %9 = vector.load %arg4[%c0_6, %c0_7] : memref<128x1xf32, #tpu.memory_space<vmem>>, vector<128x1xf32>
    %cst_8 = arith.constant dense<0.000000e+00> : vector<8x1xf32>
    %10 = tpu.matmul %8, %9, %cst_8 {dimension_numbers = #tpu.dot_dimension_numbers<[1], [0], [0], [1], [0, 0, 1, 1], [], []>} : vector<8x128xf32>, vector<128x1xf32>, vector<8x1xf32> -> vector<8x1xf32>
    %c0_9 = arith.constant 0 : index
    %11 = memref.load %arg5[%c0_9] : memref<1xf32, #tpu.memory_space<smem>>
    %12 = vector.broadcast %11 : f32 to vector<8x1xf32>
    %13 = arith.addf %10, %12 : vector<8x1xf32>
    %14 = arith.negf %13 : vector<8x1xf32>
    %15 = math.exp %14 : vector<8x1xf32>
    %cst_10 = arith.constant 1.000000e+00 : f32
    %16 = vector.broadcast %cst_10 : f32 to vector<8x1xf32>
    %17 = arith.addf %16, %15 : vector<8x1xf32>
    %18 = arith.divf %16, %17 : vector<8x1xf32>
    %c0_11 = arith.constant 0 : index
    %c0_12 = arith.constant 0 : index
    %19 = vector.load %arg6[%c0_11, %c0_12] : memref<8x1xf32, #tpu.memory_space<vmem>>, vector<8x1xf32>
    tpu.vector_store %arg6[%c0_11, %c0_12], %18 {strides = array<i32>} : memref<8x1xf32, #tpu.memory_space<vmem>>, vector<8x1xf32>,
    return
  }
  func.func @transform_0(%arg0: i32) -> (i32, i32) {
    %c0_i32 = arith.constant 0 : i32
    %c0_i32_0 = arith.constant 0 : i32
    return %arg0, %c0_i32 : i32, i32
  }
  func.func @transform_1(%arg0: i32) -> (i32, i32) {
    %c0_i32 = arith.constant 0 : i32
    %c0_i32_0 = arith.constant 0 : i32
    %c0_i32_1 = arith.constant 0 : i32
    return %c0_i32, %c0_i32_0 : i32, i32
  }
  func.func @transform_2(%arg0: i32) -> (i32, i32) {
    %c0_i32 = arith.constant 0 : i32
    %c0_i32_0 = arith.constant 0 : i32
    %c0_i32_1 = arith.constant 0 : i32
    return %c0_i32, %c0_i32_0 : i32, i32
  }
  func.func @transform_3(%arg0: i32) -> (i32, i32) {
    %c0_i32 = arith.constant 0 : i32
    %c0_i32_0 = arith.constant 0 : i32
    %c0_i32_1 = arith.constant 0 : i32
    return %c0_i32, %c0_i32_0 : i32, i32
  }
  func.func @transform_4(%arg0: i32) -> i32 {
    %c0_i32 = arith.constant 0 : i32
    %c0_i32_0 = arith.constant 0 : i32
    return %c0_i32 : i32
  }
  func.func @transform_5(%arg0: i32) -> (i32, i32) {
    %c0_i32 = arith.constant 0 : i32
    %c0_i32_0 = arith.constant 0 : i32
    return %arg0, %c0_i32 : i32, i32
  }
}

</mosaic_0001>

<bundles_post_ra>
// kernel: tpu_custom_call.1
= control target key start
LH: loop header
LB: loop body
LE: loop exit
PB: predicated region body
PF: predicated region fallthrough
CT: control target
= control target key end

     0   :  { %vm36_vm0 = vcmask 130048   ;;  %vm111_vm4 = vcmask 7168   ;;  %s222_s1 = inlined_call_operand.vmem [shape: bf16[16,128], index: 1, kind: input, shape index: {}]   ;;  %s223_s0 = inlined_call_operand.vmem [shape: f32[8,16], index: 0, kind: input, shape index: {}]   ;;  %s224_s3 = inlined_call_operand.vmem [shape: f32[128,1], index: 3, kind: input, shape index: {}]   ;;  %s225_s2 = inlined_call_operand.vmem [shape: f32[1,128], index: 2, kind: input, shape index: {}]   ;;  %s226_s4 = inlined_call_operand.<no memory space> [shape: f32[1], index: 4, kind: input, shape index: {}]   ;;  %s227_s5 = inlined_call_operand.vmem [shape: f32[8,1], index: 5, kind: output, shape index: {}]  }
   0x1   :  { %v123_v0 = vld [vmem:[%s222_s1] sm:$0xff]  ;;  %v69_v2 = vld [vmem:[%s224_s3 + $0x78] sm:$0xff]  ;;  %v68_v4 = vld [vmem:[%s224_s3 + $0x70] sm:$0xff]  ;;  %v71_v24 = vstv %s226_s4 }
   0x2   :  { %v22_v1 = vld [vmem:[%s223_s0] sm:$0xff]  ;;  %72 = vmatpush.msra.mxu1 %v69_v2  ;;  %47 = vmatpush.bf16.msra.mxu0 %v123_v0  ;;  %v67_v5 = vld [vmem:[%s224_s3 + $0x68] sm:$0xff]  ;;  %v65_v7 = vld [vmem:[%s224_s3 + $0x58] sm:$0xff] }
   0x3   :  { %v23_v3 = vpack.c.bf16 %v22_v1, %v22_v1  ;;  %v66_v6 = vld [vmem:[%s224_s3 + $0x60] sm:$0xff]  ;;  %v64_v8 = vld [vmem:[%s224_s3 + $0x50] sm:$0xff]  ;;  %v63_v9 = vld [vmem:[%s224_s3 + $0x48] sm:$0xff] }
   0x4   :  { %73 = vmatpush.msra.mxu1 %v68_v4  ;;  %v62_v10 = vld [vmem:[%s224_s3 + $0x40] sm:$0xff]  ;;  %v61_v11 = vld [vmem:[%s224_s3 + $0x38] sm:$0xff]  ;;  %v60_v12 = vld [vmem:[%s224_s3 + $0x30] sm:$0xff] }
   0x5   :  { %121 = vmatmul.msk.bf16.vlgmr.msra.gmra.mxu0 %vm36_vm0, %v23_v3  ;;  %v59_v13 = vld [vmem:[%s224_s3 + $0x28] sm:$0xff]  ;;  %v58_v14 = vld [vmem:[%s224_s3 + $0x20] sm:$0xff]  ;;  %v57_v15 = vld [vmem:[%s224_s3 + $0x18] sm:$0xff] }
   0x6   :  { %74 = vmatpush.msra.mxu1 %v67_v5  ;;  %v56_v16 = vld [vmem:[%s224_s3 + $0x10] sm:$0xff]  ;;  %v55_v17 = vld [vmem:[%s224_s3 + $0x8] sm:$0xff]  ;;  %v54_v18 = vld [vmem:[%s224_s3] sm:$0xff] }
   0x7   :  { %v124_v19 = vld [vmem:[%s225_s2] ss:$0 sm:$0xff] }
   0x8   :  { %75 = vmatpush.msra.mxu1 %v66_v6 }
   0xa   :  { %76 = vmatpush.msra.mxu1 %v65_v7 }
   0xc   :  { %77 = vmatpush.msra.mxu1 %v64_v8 }
   0xe   :  { %78 = vmatpush.msra.mxu1 %v63_v9 }
  0x10   :  { %79 = vmatpush.msra.mxu1 %v62_v10 }
  0x12   :  { %80 = vmatpush.msra.mxu1 %v61_v11 }
  0x14   :  { %81 = vmatpush.msra.mxu1 %v60_v12 }
  0x16   :  { %82 = vmatpush.msra.mxu1 %v59_v13 }
  0x18   :  { %83 = vmatpush.msra.mxu1 %v58_v14 }
  0x1a   :  { %84 = vmatpush.msra.mxu1 %v57_v15 }
  0x1c   :  { %85 = vmatpush.msra.mxu1 %v56_v16 }
  0x1e   :  { %86 = vmatpush.msra.mxu1 %v55_v17 }
  0x20   :  { %87 = vmatpush.msra.mxu1 %v54_v18 }
  0x82   :  { %v49_v20 = vpop.f32.mrf.mxu0 }
  0x83   :  { %v50_v21 = vadd.f32 %v124_v19, %v49_v20 }
  0x85   :  { %v53_v22 = vmax.f32 %v50_v21, 0.0 }
  0x87   :  { %88 = vmatmul.f32.vlgmr.msra.gmra.mxu1 %v53_v22 }
  0x8a   :  { %v51_v23 = vpop.f32.mrf.mxu0 }
 0x104   :  { %v89_v25 = vpop.f32.mrf.mxu1 }
 0x105   :  { %v90_v26 = vadd.f32 %v89_v25, %v71_v24 }
 0x107   :  { %v122_v27 = vmul.f32 -1.442695, %v90_v26 }
 0x109   :  { %125 = vpow2.f32 %v122_v27 }
 0x10f   :  { %v126_v28 = vpop.eup %125 }
 0x110   :  { %v95_v29 = vadd.f32 1.0, %v126_v28 }
 0x112   :  { %127 = vrcp.f32 %v95_v29  ;;  %v107_v33 = vand.u32 2147483648, %v95_v29  ;;  %v105_v35 = vand.u32 2147483647, %v95_v29  ;;  %vm101_vm2 = vweird.f32 %v95_v29 }
 0x114   :  { %v108_v37 = vor.u32 1.1754944e-38, %v107_v33  ;;  %vm106_vm5 = vcmp.eq.f32.partialorder %v105_v35, 8.507059e+37 }
 0x118   :  { %v128_v30 = vpop.eup %127 }
 0x119   :  { %v97_v31 = vmul.f32 %v128_v30, %v95_v29  ;;  %vm102_vm1 = vweird.f32 %v128_v30 }
 0x11a   :  { %vm103_vm3 = vmor %vm101_vm2, %vm102_vm1 }
 0x11b   :  { %v98_v32 = vsub.f32 1.0, %v97_v31 }
 0x11d   :  { %v99_v34 = vmul.f32 %v128_v30, %v98_v32 }
 0x11f   :  { %v100_v36 = vadd.f32 %v128_v30, %v99_v34 }
 0x121   :  { %v104_v38 = vsel %vm103_vm3, %v128_v30, %v100_v36 }
 0x122   :  { %v109_v39 = vsel %vm106_vm5, %v108_v37, %v104_v38 }
 0x123   :  { %112 = vst.msk [vmem:[%s227_s5] sm:$0xff] %vm111_vm4, %v109_v39 }

// kernel: tpu_custom_call.1
= control target key start
LH: loop header
LB: loop body
LE: loop exit
PB: predicated region body
PF: predicated region fallthrough
CT: control target
= control target key end

     0   :  { %vm36_vm0 = vcmask 130048   ;;  %vm111_vm4 = vcmask 7168   ;;  %s222_s1 = inlined_call_operand.vmem [shape: bf16[16,128], index: 1, kind: input, shape index: {}]   ;;  %s223_s0 = inlined_call_operand.vmem [shape: f32[8,16], index: 0, kind: input, shape index: {}]   ;;  %s224_s3 = inlined_call_operand.vmem [shape: f32[128,1], index: 3, kind: input, shape index: {}]   ;;  %s225_s2 = inlined_call_operand.vmem [shape: f32[1,128], index: 2, kind: input, shape index: {}]   ;;  %s226_s4 = inlined_call_operand.<no memory space> [shape: f32[1], index: 4, kind: input, shape index: {}]   ;;  %s227_s5 = inlined_call_operand.vmem [shape: f32[8,1], index: 5, kind: output, shape index: {}]  }
   0x1   :  { %v123_v0 = vld [vmem:[%s222_s1] sm:$0xff]  ;;  %v69_v2 = vld [vmem:[%s224_s3 + $0x78] sm:$0xff]  ;;  %v68_v4 = vld [vmem:[%s224_s3 + $0x70] sm:$0xff]  ;;  %v71_v24 = vstv %s226_s4 }
   0x2   :  { %v22_v1 = vld [vmem:[%s223_s0] sm:$0xff]  ;;  %72 = vmatpush.msra.mxu1 %v69_v2  ;;  %47 = vmatpush.bf16.msra.mxu0 %v123_v0  ;;  %v67_v5 = vld [vmem:[%s224_s3 + $0x68] sm:$0xff]  ;;  %v65_v7 = vld [vmem:[%s224_s3 + $0x58] sm:$0xff] }
   0x3   :  { %v23_v3 = vpack.c.bf16 %v22_v1, %v22_v1  ;;  %v66_v6 = vld [vmem:[%s224_s3 + $0x60] sm:$0xff]  ;;  %v64_v8 = vld [vmem:[%s224_s3 + $0x50] sm:$0xff]  ;;  %v63_v9 = vld [vmem:[%s224_s3 + $0x48] sm:$0xff] }
   0x4   :  { %73 = vmatpush.msra.mxu1 %v68_v4  ;;  %v62_v10 = vld [vmem:[%s224_s3 + $0x40] sm:$0xff]  ;;  %v61_v11 = vld [vmem:[%s224_s3 + $0x38] sm:$0xff]  ;;  %v60_v12 = vld [vmem:[%s224_s3 + $0x30] sm:$0xff] }
   0x5   :  { %121 = vmatmul.msk.bf16.vlgmr.msra.gmra.mxu0 %vm36_vm0, %v23_v3  ;;  %v59_v13 = vld [vmem:[%s224_s3 + $0x28] sm:$0xff]  ;;  %v58_v14 = vld [vmem:[%s224_s3 + $0x20] sm:$0xff]  ;;  %v57_v15 = vld [vmem:[%s224_s3 + $0x18] sm:$0xff] }
   0x6   :  { %74 = vmatpush.msra.mxu1 %v67_v5  ;;  %v56_v16 = vld [vmem:[%s224_s3 + $0x10] sm:$0xff]  ;;  %v55_v17 = vld [vmem:[%s224_s3 + $0x8] sm:$0xff]  ;;  %v54_v18 = vld [vmem:[%s224_s3] sm:$0xff] }
   0x7   :  { %v124_v19 = vld [vmem:[%s225_s2] ss:$0 sm:$0xff] }
   0x8   :  { %75 = vmatpush.msra.mxu1 %v66_v6 }
   0xa   :  { %76 = vmatpush.msra.mxu1 %v65_v7 }
   0xc   :  { %77 = vmatpush.msra.mxu1 %v64_v8 }
   0xe   :  { %78 = vmatpush.msra.mxu1 %v63_v9 }
  0x10   :  { %79 = vmatpush.msra.mxu1 %v62_v10 }
  0x12   :  { %80 = vmatpush.msra.mxu1 %v61_v11 }
  0x14   :  { %81 = vmatpush.msra.mxu1 %v60_v12 }
  0x16   :  { %82 = vmatpush.msra.mxu1 %v59_v13 }
  0x18   :  { %83 = vmatpush.msra.mxu1 %v58_v14 }
  0x1a   :  { %84 = vmatpush.msra.mxu1 %v57_v15 }
  0x1c   :  { %85 = vmatpush.msra.mxu1 %v56_v16 }
  0x1e   :  { %86 = vmatpush.msra.mxu1 %v55_v17 }
  0x20   :  { %87 = vmatpush.msra.mxu1 %v54_v18 }
  0x82   :  { %v49_v20 = vpop.f32.mrf.mxu0 }
  0x83   :  { %v50_v21 = vadd.f32 %v124_v19, %v49_v20 }
  0x85   :  { %v53_v22 = vmax.f32 %v50_v21, 0.0 }
  0x87   :  { %88 = vmatmul.f32.vlgmr.msra.gmra.mxu1 %v53_v22 }
  0x8a   :  { %v51_v23 = vpop.f32.mrf.mxu0 }
 0x104   :  { %v89_v25 = vpop.f32.mrf.mxu1 }
 0x105   :  { %v90_v26 = vadd.f32 %v89_v25, %v71_v24 }
 0x107   :  { %v122_v27 = vmul.f32 -1.442695, %v90_v26 }
 0x109   :  { %125 = vpow2.f32 %v122_v27 }
 0x10f   :  { %v126_v28 = vpop.eup %125 }
 0x110   :  { %v95_v29 = vadd.f32 1.0, %v126_v28 }
 0x112   :  { %127 = vrcp.f32 %v95_v29  ;;  %v107_v33 = vand.u32 2147483648, %v95_v29  ;;  %v105_v35 = vand.u32 2147483647, %v95_v29  ;;  %vm101_vm2 = vweird.f32 %v95_v29 }
 0x114   :  { %v108_v37 = vor.u32 1.1754944e-38, %v107_v33  ;;  %vm106_vm5 = vcmp.eq.f32.partialorder %v105_v35, 8.507059e+37 }
 0x118   :  { %v128_v30 = vpop.eup %127 }
 0x119   :  { %v97_v31 = vmul.f32 %v128_v30, %v95_v29  ;;  %vm102_vm1 = vweird.f32 %v128_v30 }
 0x11a   :  { %vm103_vm3 = vmor %vm101_vm2, %vm102_vm1 }
 0x11b   :  { %v98_v32 = vsub.f32 1.0, %v97_v31 }
 0x11d   :  { %v99_v34 = vmul.f32 %v128_v30, %v98_v32 }
 0x11f   :  { %v100_v36 = vadd.f32 %v128_v30, %v99_v34 }
 0x121   :  { %v104_v38 = vsel %vm103_vm3, %v128_v30, %v100_v36 }
 0x122   :  { %v109_v39 = vsel %vm106_vm5, %v108_v37, %v104_v38 }
 0x123   :  { %112 = vst.msk [vmem:[%s227_s5] sm:$0xff] %vm111_vm4, %v109_v39 }

</bundles_post_ra>
